<compile_context>
chip_gen: v7x
topology: tpu7x:2x2x1
jax: 0.10.0
libtpu: 0.0.40
codegen_flags: <defaults>
</compile_context>

<pallas_src>
import math

import jax
import jax.numpy as jnp
from jax.experimental import pallas as pl
from jax.experimental.pallas import tpu as pltpu


_HEADROOM = 4 << 20  # VMEM slack for Mosaic internal scratch / misc buffers


# ---------------------------------------------------------------------------
# DCT filter construction (mirrors get_dct_filter / build_filter exactly).
# Only mapper_x / height enter the filter, as in the reference module.
# ---------------------------------------------------------------------------
def build_dct_filter(height, mapper_x, channel):
    assert channel % len(mapper_x) == 0
    c_part = channel // len(mapper_x)
    rows = []
    for u_x in mapper_x:
        vals = []
        for t_x in range(height):
            r = math.cos(math.pi * u_x * (t_x + 0.5) / height) / math.sqrt(height)
            if u_x != 0:
                r *= math.sqrt(2)
            vals.append(r)
        row = jnp.asarray(vals, dtype=jnp.float32)            # (height,)
        rows.append(jnp.broadcast_to(row, (c_part, height)))  # (c_part, height)
    return jnp.concatenate(rows, axis=0)                      # (channel, height)


# ---------------------------------------------------------------------------
# Small layout / budgeting helpers.
# ---------------------------------------------------------------------------
def _round_up(v, m):
    return ((int(v) + m - 1) // m) * m


def _sublane_mult(dtype):
    # 8 for 32-bit, 16 for 16-bit, 32 for 8-bit element types.
    return max(8, 32 // jnp.dtype(dtype).itemsize)


def _padded_block_bytes(shape, dtype):
    """VMEM footprint of one block: last dim padded to 128 lanes, second-to-last
    to the dtype sublane multiple."""
    itemsize = jnp.dtype(dtype).itemsize
    if len(shape) == 1:
        return _round_up(shape[0], 128) * itemsize
    lead = 1
    for d in shape[:-2]:
        lead *= int(d)
    sub = _round_up(shape[-2], _sublane_mult(dtype))
    lane = _round_up(shape[-1], 128)
    return lead * sub * lane * itemsize


def _vmem_usable_bytes():
    """~50% of physical per-core VMEM (generation-aware: ~32 MiB on v7x,
    ~64 MiB on v5e/v6e), floored at 16 MiB."""
    try:
        cap = int(pltpu.get_tpu_info().vmem_capacity_bytes)
    except Exception:
        cap = 64 << 20  # conservative fallback
    return max(cap // 2, 16 << 20)


def _choose_tn(N, per_row_bytes, budget_bytes):
    """Batch tile = sublane dim of the output: multiple of 8, or full N."""
    tn = int(budget_bytes) // max(int(per_row_bytes), 1)
    if tn >= N or N <= 8:
        return N
    return max(8, (tn // 8) * 8)


def _maybe_split_for_megacore(N, tn, other_blocks):
    """v7x has two TensorCores; make sure a 'parallel' grid axis has >= 2 blocks
    whenever the (8,128) layout rules allow it (no effect on v5e/v6e)."""
    if other_blocks > 1 or tn < N or N < 16:
        return tn
    return max(8, (N // 2) // 8 * 8)


# ---------------------------------------------------------------------------
# Kernels.
# ---------------------------------------------------------------------------
def _dct_mxu_kernel(x_ref, w_ref, o_ref):
    # x_ref: (tn, tc*HW) lane-dense slab; w_ref: (tc*HW, tc) block-diagonal
    # weight; o_ref: (tn, tc).  f32 accumulation on the MXU.
    o_ref[...] = jnp.dot(x_ref[...], w_ref[...],
                         preferred_element_type=jnp.float32).astype(o_ref.dtype)


def _dct_vpu_kernel(x_ref, w_ref, o_ref):
    # x_ref: (tn, tc, HW); w_ref: (tc, HW) (bf16 storage); o_ref: (tn, tc).
    x = x_ref[...].astype(jnp.float32)
    w = w_ref[...].astype(jnp.float32)
    o_ref[...] = jnp.sum(x * w[None, :, :], axis=-1).astype(o_ref.dtype)


def _dct_split_kernel(x_ref, w_ref, o_ref, acc_ref):
    # x_ref: (tn, tc, th, W); w_ref: (tc, th, 1); o_ref / acc_ref: (tn, tc).
    # H is the reduction grid axis (last, "arbitrary"): P3 accumulator pattern.
    k = pl.program_id(2)

    @pl.when(k == 0)
    def _init():
        acc_ref[...] = jnp.zeros_like(acc_ref)

    x = x_ref[...].astype(jnp.float32)
    w = w_ref[...].astype(jnp.float32)
    part = jnp.sum(x * w[None, :, :, :], axis=-1)   # (tn, tc, th)
    acc_ref[...] += jnp.sum(part, axis=-1)          # (tn, tc)

    @pl.when(k == pl.num_programs(2) - 1)
    def _finalize():
        o_ref[...] = acc_ref[...].astype(o_ref.dtype)


# ---------------------------------------------------------------------------
# Path A: small spatial -> block-diagonal MXU matmul on a (N, C*HW) view.
# ---------------------------------------------------------------------------
def _forward_mxu(x, w_pool, tc, w_dtype, target_tile_bytes, usable):
    N, C, H, W = x.shape
    HW = H * W
    itemsize = jnp.dtype(x.dtype).itemsize
    c_blocks = C // tc

    # Stacked per-C-block block-diagonal weight:
    #   w_bd[b*tc*HW + p*HW + s, q] = (dct[b*tc + p, h] / W) * delta(p, q), s = h*W + w
    w_exp = jnp.repeat(w_pool, W, axis=1)                      # (C, HW) f32
    w3 = w_exp.reshape(c_blocks, tc, HW)
    eye = jnp.eye(tc, dtype=jnp.float32)
    w_bd = jnp.einsum("bps,pq->bpsq", w3, eye)                 # (cb, tc, HW, tc)
    w_bd = w_bd.reshape(c_blocks * tc * HW, tc).astype(w_dtype)

    x2 = x.reshape(N, C * HW)                                  # free view of contiguous NCHW

    w_blk_pad = _padded_block_bytes((tc * HW, tc), w_dtype)
    per_row = _round_up(tc * HW, 128) * itemsize               # one batch row of the x block
    avail = max(usable - 2 * w_blk_pad - _HEADROOM, 1 << 20)
    x_budget = min(target_tile_bytes, avail // 2)
    tn = _choose_tn(N, per_row, x_budget)
    tn = _maybe_split_for_megacore(N, tn, c_blocks)

    x_pad = _padded_block_bytes((tn, tc * HW), x.dtype)
    o_pad = _padded_block_bytes((tn, tc), jnp.float32)
    needed = 2 * (x_pad + w_blk_pad + o_pad) + _HEADROOM
    vmem_limit = int(min(usable, max(needed, 16 << 20)))

    grid = (c_blocks, pl.cdiv(N, tn))

    return pl.pallas_call(
        _dct_mxu_kernel,
        out_shape=jax.ShapeDtypeStruct((N, C), jnp.float32),
        grid_spec=pltpu.PrefetchScalarGridSpec(
            num_scalar_prefetch=0,
            grid=grid,
            in_specs=[
                pl.BlockSpec((tn, tc * HW), lambda i, j: (j, i)),   # x, lane-dense
                pl.BlockSpec((tc * HW, tc), lambda i, j: (i, 0)),   # block-diag weight (resident)
            ],
            out_specs=pl.BlockSpec((tn, tc), lambda i, j: (j, i)),
        ),
        compiler_params=pltpu.CompilerParams(
            dimension_semantics=("parallel", "parallel"),
            vmem_limit_bytes=vmem_limit,
        ),
        cost_estimate=pl.CostEstimate(
            flops=2 * N * C * HW * tc,
            transcendentals=0,
            bytes_accessed=(N * C * HW * itemsize
                            + c_blocks * tc * HW * tc * jnp.dtype(w_dtype).itemsize
                            + N * C * 4),
        ),
    )(x2, w_bd)


# ---------------------------------------------------------------------------
# Path B: fused multiply + reduce over the flattened (N, C, HW) view.
# ---------------------------------------------------------------------------
def _forward_vpu(x, w_pool, tc, target_tile_bytes, usable, upcast_ratio):
    N, C, H, W = x.shape
    HW = H * W
    itemsize = jnp.dtype(x.dtype).itemsize
    c_blocks = C // tc

    x_budget = min(target_tile_bytes, usable // 4)

    def per_row_bytes(tc_):
        # padded footprint of one batch row of the x block, incl. f32 upcast temp
        return int(_padded_block_bytes((1, tc_, HW), x.dtype) * (1.0 + upcast_ratio))

    tn = _choose_tn(N, per_row_bytes(tc), x_budget)

    # If N is exhausted and the per-step tile is still far below the target,
    # widen the channel tile (keeps per-grid-step DMA near the 4-8 MiB sweet
    # spot) without dropping below 2 blocks when megacore could use them.
    while (tn == N and c_blocks > 1 and c_blocks % 2 == 0
           and (c_blocks // 2 >= 2 or N >= 16)
           and N * per_row_bytes(tc * 2) <= x_budget):
        tc *= 2
        c_blocks //= 2

    tn = _maybe_split_for_megacore(N, tn, c_blocks)

    # bf16 storage for the streamed DCT weight (1/W folded in); f32 accumulation
    # happens inside the kernel.
    w_exp = jnp.repeat(w_pool, W, axis=1).astype(jnp.bfloat16)   # (C, HW)
    x3 = x.reshape(N, C, HW)                                     # free view of contiguous NCHW

    x_pad = _padded_block_bytes((tn, tc, HW), x.dtype)
    f32_tmp = 0 if x.dtype == jnp.float32 else _padded_block_bytes((tn, tc, HW), jnp.float32)
    w_pad = _padded_block_bytes((tc, HW), jnp.bfloat16)
    o_pad = _padded_block_bytes((tn, tc), jnp.float32)
    needed = 2 * (x_pad + w_pad + o_pad) + f32_tmp + _HEADROOM
    vmem_limit = int(min(usable, max(needed, 16 << 20)))

    grid = (c_blocks, pl.cdiv(N, tn))   # N fastest -> weight tile stays VMEM-resident

    return pl.pallas_call(
        _dct_vpu_kernel,
        out_shape=jax.ShapeDtypeStruct((N, C), jnp.float32),
        grid_spec=pltpu.PrefetchScalarGridSpec(
            num_scalar_prefetch=0,
            grid=grid,
            in_specs=[
                pl.BlockSpec((tn, tc, HW), lambda i, j: (j, i, 0)),   # x
                pl.BlockSpec((tc, HW), lambda i, j: (i, 0)),          # weight (C-block resident)
            ],
            out_specs=pl.BlockSpec((tn, tc), lambda i, j: (j, i)),
        ),
        compiler_params=pltpu.CompilerParams(
            dimension_semantics=("parallel", "parallel"),
            vmem_limit_bytes=vmem_limit,
        ),
        cost_estimate=pl.CostEstimate(
            flops=2 * N * C * HW,
            transcendentals=0,
            bytes_accessed=N * C * HW * itemsize + C * HW * 2 + N * C * 4,
        ),
    )(x3, w_exp)


# ---------------------------------------------------------------------------
# Path C: very large spatial -> split H across an "arbitrary" grid axis with a
# VMEM accumulator (P3 pattern).
# ---------------------------------------------------------------------------
def _forward_split(x, w_pool, tc, target_tile_bytes, usable, upcast_ratio, h_cands):
    N, C, H, W = x.shape
    itemsize = jnp.dtype(x.dtype).itemsize
    c_blocks = C // tc
    min_tn = N if N < 8 else 8
    x_budget = min(target_tile_bytes, usable // 4)

    # Largest multiple-of-8 divisor of H whose tile fits the budget (exact
    # division so the reduction never sees out-of-bounds garbage).
    th = h_cands[0]
    for d in sorted(h_cands, reverse=True):
        tile = int(_padded_block_bytes((min_tn, tc, d, W), x.dtype) * (1.0 + upcast_ratio))
        if tile <= x_budget:
            th = d
            break

    per_row = int(_padded_block_bytes((1, tc, th, W), x.dtype) * (1.0 + upcast_ratio))
    tn = _choose_tn(N, per_row, x_budget)
    tn = _maybe_split_for_megacore(N, tn, c_blocks)

    w_h = w_pool.reshape(C, H, 1).astype(jnp.bfloat16)           # (C, H, 1) bf16 storage

    x_pad = _padded_block_bytes((tn, tc, th, W), x.dtype)
    f32_tmp = 0 if x.dtype == jnp.float32 else _padded_block_bytes((tn, tc, th, W), jnp.float32)
    w_pad = _padded_block_bytes((tc, th, 1), jnp.bfloat16)
    o_pad = _padded_block_bytes((tn, tc), jnp.float32)
    needed = 2 * (x_pad + w_pad + o_pad) + f32_tmp + o_pad + _HEADROOM
    vmem_limit = int(min(usable, max(needed, 16 << 20)))

    grid = (c_blocks, pl.cdiv(N, tn), H // th)   # H chunks last ("arbitrary")

    return pl.pallas_call(
        _dct_split_kernel,
        out_shape=jax.ShapeDtypeStruct((N, C), jnp.float32),
        grid_spec=pltpu.PrefetchScalarGridSpec(
            num_scalar_prefetch=0,
            grid=grid,
            in_specs=[
                pl.BlockSpec((tn, tc, th, W), lambda i, j, k: (j, i, k, 0)),  # x
                pl.BlockSpec((tc, th, 1), lambda i, j, k: (i, k, 0)),          # weight
            ],
            out_specs=pl.BlockSpec((tn, tc), lambda i, j, k: (j, i)),
            scratch_shapes=[pltpu.VMEM((tn, tc), jnp.float32)],
        ),
        compiler_params=pltpu.CompilerParams(
            dimension_semantics=("parallel", "parallel", "arbitrary"),
            vmem_limit_bytes=vmem_limit,
        ),
        cost_estimate=pl.CostEstimate(
            flops=2 * N * C * H * W,
            transcendentals=0,
            bytes_accessed=N * C * H * W * itemsize + C * H * 2 + N * C * 4,
        ),
    )(x, w_h)


# ---------------------------------------------------------------------------
# Public wrapper (path dispatch).
# ---------------------------------------------------------------------------
def multi_spectral_dct(x, height, width, mapper_x, mapper_y, channel,
                       target_tile_bytes=8 << 20, mxu_hw_limit=128):
    assert x.ndim == 4, "x must been 4 dimensions, but got " + str(x.ndim)
    assert len(mapper_x) == len(mapper_y)
    assert channel % len(mapper_x) == 0
    N, C, H, W = x.shape
    assert C == channel
    # TODO(synk): general AdaptiveAvgPool2d when input H != height (adaptive bins
    # along H); identity pooling along H is exact for the standard H == height case.
    assert H == height, "kernel assumes input spatial height == pooled height"
    # `width` / `mapper_y` only affect length checks in the reference module.

    HW = H * W
    upcast_ratio = 0.0 if x.dtype == jnp.float32 else 4.0 / jnp.dtype(x.dtype).itemsize
    usable = _vmem_usable_bytes()

    # DCT filter with the 1/W average-pool normalization folded in.
    dct = build_dct_filter(height, mapper_x, channel)            # (C, H) f32
    w_pool = dct / jnp.float32(W)

    # Channel tile = lane dim of the output: multiple of 128, or full C.
    tc = 128 if C % 128 == 0 else C

    # Path A: small spatial -> lane-dense (N, C*HW) view + block-diag MXU matmul.
    if HW <= mxu_hw_limit:
        w_dtype = jnp.bfloat16 if x.dtype == jnp.bfloat16 else jnp.float32
        w_blk_pad = _padded_block_bytes((tc * HW, tc), w_dtype)
        if 2 * w_blk_pad <= usable // 4:
            return _forward_mxu(x, w_pool, tc, w_dtype, target_tile_bytes, usable)

    # Paths B / C: fused multiply + reduce on the VPU (f32 accumulation).
    min_tn = N if N < 8 else 8
    x_budget = min(target_tile_bytes, usable // 4)
    min_tile_b = int(_padded_block_bytes((min_tn, tc, HW), x.dtype) * (1.0 + upcast_ratio))
    h_cands = [d for d in range(8, H, 8) if H % d == 0]
    if min_tile_b > x_budget and h_cands:
        return _forward_split(x, w_pool, tc, target_tile_bytes, usable,
                              upcast_ratio, h_cands)
    return _forward_vpu(x, w_pool, tc, target_tile_bytes, usable, upcast_ratio)


# ---------------------------------------------------------------------------
# Pure-JAX reference of the module forward. `weight_dtype` mirrors the storage
# precision the kernel uses for the streamed DCT weight (bf16 on VPU paths).
# ---------------------------------------------------------------------------
def _reference(x, height, mapper_x, channel, weight_dtype=jnp.float32):
    W = x.shape[3]
    w = build_dct_filter(height, mapper_x, channel) / jnp.float32(W)   # (C, H), 1/W folded
    w = w.astype(weight_dtype).astype(jnp.float32)
    xs = jnp.sum(x.astype(jnp.float32), axis=3)                        # (N, C, H)
    return jnp.sum(xs * w[None, :, :], axis=2)                         # (N, C)


if __name__ == "__main__":
    key = jax.random.PRNGKey(0)
    k1, k2, k3 = jax.random.split(key, 3)

    # ---- 1) Small module-default-ish shape (VPU path B) ----------------------
    N, C, H, W = 2, 4, 16, 16
    mapper_x = [0, 2]
    mapper_y = [0, 2]
    x = jax.random.normal(k1, (N, C, H, W), dtype=jnp.float32)
    out = jax.block_until_ready(multi_spectral_dct(x, H, W, mapper_x, mapper_y, C))
    ref = _reference(x, H, mapper_x, C, weight_dtype=jnp.bfloat16)  # kernel stores w in bf16
    assert out.shape == (N, C)
    assert jnp.allclose(out, ref, atol=1e-4, rtol=1e-4), "path B mismatch"
    # loose sanity check against the exact f32 module semantics
    assert jnp.allclose(out, _reference(x, H, mapper_x, C), atol=2e-2, rtol=2e-2)

    # ---- 2) FcaNet-style small spatial (MXU block-diagonal matmul, path A) ---
    N2, C2, H2, W2 = 4, 256, 7, 7
    mapper_x2 = [0, 1, 2, 3]
    mapper_y2 = [0, 1, 2, 3]
    x2 = jax.random.normal(k2, (N2, C2, H2, W2), dtype=jnp.float32)
    out2 = jax.block_until_ready(multi_spectral_dct(x2, H2, W2, mapper_x2, mapper_y2, C2))
    ref2 = _reference(x2, H2, mapper_x2, C2)   # f32 weights on this path
    assert out2.shape == (N2, C2)
    assert jnp.allclose(out2, ref2, atol=5e-3, rtol=5e-3), "path A mismatch"

    # ---- 3) Forced H-split accumulator path (tiny tile budget, path C) -------
    N3, C3, H3, W3 = 8, 128, 16, 16
    mapper_x3 = [0, 1, 2, 3]
    mapper_y3 = [0, 1, 2, 3]
    x3 = jax.random.normal(k3, (N3, C3, H3, W3), dtype=jnp.float32)
    out3 = jax.block_until_ready(
        multi_spectral_dct(x3, H3, W3, mapper_x3, mapper_y3, C3,
                           target_tile_bytes=256 * 1024))
    ref3 = _reference(x3, H3, mapper_x3, C3, weight_dtype=jnp.bfloat16)
    assert out3.shape == (N3, C3)
    assert jnp.allclose(out3, ref3, atol=1e-4, rtol=1e-4), "path C mismatch"

    print("KERNEL_OK")
</pallas_src>

<mosaic_0001>
module attributes {stable_mosaic.version = 11 : i64} {
  func.func @_dct_vpu_kernel(%arg0: i32, %arg1: i32, %arg2: memref<2x4x256xf32, #tpu.memory_space<vmem>>, %arg3: memref<4x256xbf16, #tpu.memory_space<vmem>>, %arg4: memref<2x4xf32, #tpu.memory_space<vmem>>) attributes {dimension_semantics = [#tpu.dimension_semantics<parallel>, #tpu.dimension_semantics<parallel>], iteration_bounds = array<i64: 1, 1>, scalar_prefetch = 0 : i64, scratch_operands = 0 : i64, tpu.core_type = #tpu.core_type<tc>, window_params = [{transform_indices = @transform_0, window_bounds = array<i64: 2, 4, 256>}, {transform_indices = @transform_1, window_bounds = array<i64: 4, 256>}, {transform_indices = @transform_2, window_bounds = array<i64: 2, 4>}]} {
    %c0 = arith.constant 0 : index
    %c0_0 = arith.constant 0 : index
    %c0_1 = arith.constant 0 : index
    %0 = vector.load %arg2[%c0, %c0_0, %c0_1] : memref<2x4x256xf32, #tpu.memory_space<vmem>>, vector<2x4x256xf32>
    %c0_2 = arith.constant 0 : index
    %c0_3 = arith.constant 0 : index
    %1 = vector.load %arg3[%c0_2, %c0_3] : memref<4x256xbf16, #tpu.memory_space<vmem>>, vector<4x256xbf16>
    %2 = arith.extf %1 : vector<4x256xbf16> to vector<4x256xf32>
    %3 = vector.shape_cast %2 : vector<4x256xf32> to vector<1x4x256xf32>
    %4 = vector.broadcast %3 : vector<1x4x256xf32> to vector<2x4x256xf32>
    %5 = arith.mulf %0, %4 : vector<2x4x256xf32>
    %cst = arith.constant dense<0.000000e+00> : vector<2x4xf32>
    %6 = vector.multi_reduction <add>, %5, %cst [2] : vector<2x4x256xf32> to vector<2x4xf32>
    %c0_4 = arith.constant 0 : index
    %c0_5 = arith.constant 0 : index
    %7 = vector.load %arg4[%c0_4, %c0_5] : memref<2x4xf32, #tpu.memory_space<vmem>>, vector<2x4xf32>
    tpu.vector_store %arg4[%c0_4, %c0_5], %6 {strides = array<i32>} : memref<2x4xf32, #tpu.memory_space<vmem>>, vector<2x4xf32>,
    return
  }
  func.func @transform_0(%arg0: i32, %arg1: i32) -> (i32, i32, i32) {
    %c0_i32 = arith.constant 0 : i32
    %c0_i32_0 = arith.constant 0 : i32
    return %arg1, %arg0, %c0_i32 : i32, i32, i32
  }
  func.func @transform_1(%arg0: i32, %arg1: i32) -> (i32, i32) {
    %c0_i32 = arith.constant 0 : i32
    %c0_i32_0 = arith.constant 0 : i32
    return %arg0, %c0_i32 : i32, i32
  }
  func.func @transform_2(%arg0: i32, %arg1: i32) -> (i32, i32) {
    %c0_i32 = arith.constant 0 : i32
    return %arg1, %arg0 : i32, i32
  }
}

</mosaic_0001>

<bundles_post_ra>
// kernel: tpu_custom_call.1
= control target key start
LH: loop header
LB: loop body
LE: loop exit
PB: predicated region body
PF: predicated region fallthrough
CT: control target
= control target key end

     0   :  { %7 = vsyncpa [#allocation3], 0  ;;  %s227_s0 = inlined_call_operand.hbm [shape: f32[2,4,256], index: 0, kind: input, shape index: {}]   ;;  %s228_s1 = inlined_call_operand.hbm [shape: bf16[4,256], index: 1, kind: input, shape index: {}]   ;;  %s229_s2 = inlined_call_operand.hbm [shape: f32[2,4], index: 2, kind: output, shape index: {}]  }
   0x1   :  { %8 = vsyncpa [#allocation6], 0 }
   0x2   :  { %9 = vsyncpa [#allocation4], 0  ;;  %s171_s9 = smov [#allocation2]   ;;  %s99_s13 = scalar_lea.hbm %s227_s0, 256 }
   0x3   :  { %s15_s10 = sshll.u32 %s171_s9, 4  ;;  %p100_p0 = scmp.ne.s32.totalorder %s227_s0, %s99_s13  ;;  %s16_s10 = int_to_ptr.vmem [resolvable:$true] %s15_s10 }
   0x4   :  { %p103_p1 = scmp.lt.u32.totalorder %s99_s13, %s227_s0 }
   0x6   :  { %p105_p2 = pnand %p103_p1, %p100_p0 }
   0x8   :  { %108 = shalt.err (!%p105_p2)
}
   0x9   :  { %s109_s18 = scalar_lea.vmem %s16_s10, 256  ;;  %p114_p4 = scmp.lt.s32.totalorder %s16_s10, %s16_s10 }
   0xa   :  { %p110_p3 = scmp.ne.s32.totalorder %s16_s10, %s109_s18  ;;  %p115_p5 = scmp.lt.s32.totalorder %s109_s18, %s109_s18 }
   0xc   :  { %p116_p6 = por %p115_p5, %p114_p4 }
   0xe   :  { %p117_p7 = pnand %p116_p6, %p110_p3 }
  0x10   :  { %120 = shalt.err (!%p117_p7)
}
  0x11   :  { %s172_s19 = smov 128   ;;  %s173_s20 = smov 8  }
  0x12   :  { %21 = dma.hbm_to_vmem [thread:$0]  %s227_s0, 256, %s16_s10, [#allocation3], %s172_s19, %s172_s19, %s173_s20  }
  0x13   :  { %s174_s23 = smov [#allocation5]   ;;  %s121_s27 = scalar_lea.hbm %s228_s1, 64 }
  0x14   :  { %s28_s24 = sshll.u32 %s174_s23, 4  ;;  %p122_p8 = scmp.ne.s32.totalorder %s228_s1, %s121_s27  ;;  %s29_s24 = int_to_ptr.vmem [resolvable:$true] %s28_s24 }
  0x15   :  { %p125_p9 = scmp.lt.u32.totalorder %s121_s27, %s228_s1 }
  0x17   :  { %p127_p10 = pnand %p125_p9, %p122_p8 }
  0x19   :  { %130 = shalt.err (!%p127_p10)
}
  0x1a   :  { %s131_s4 = scalar_lea.vmem %s29_s24, 64  ;;  %p136_p12 = scmp.lt.s32.totalorder %s29_s24, %s29_s24 }
  0x1b   :  { %p132_p11 = scmp.ne.s32.totalorder %s29_s24, %s131_s4  ;;  %p137_p13 = scmp.lt.s32.totalorder %s131_s4, %s131_s4 }
  0x1d   :  { %p138_p0 = por %p137_p13, %p136_p12 }
  0x1f   :  { %p139_p1 = pnand %p138_p0, %p132_p11 }
  0x21   :  { %142 = shalt.err (!%p139_p1)
}
  0x22   :  { %31 = dma.hbm_to_vmem [thread:$0]  %s228_s1, 64, %s29_s24, [#allocation6]  }
  0x23   :  { %165 = dma.done.wait [#allocation3], 256  }
  0x24   :  { %166 = vsyncadd [#allocation3], 4294967040 }
  0x25   :  { %167 = dma.done.wait [#allocation6], 64  }
  0x26   :  { %168 = vsyncadd [#allocation6], 4294967232  ;;  %v38_v0 = vld [vmem:[#allocation2] sm:$0xff]  ;;  %v40_v1 = vld [vmem:[#allocation5] sm:$0xf]  ;;  %vm50_vm0 = vcmask 1043456   ;;  %v63_v14 = vlaneseq }
  0x27   :  { %v39_v2 = vld [vmem:[#allocation2 + $0x8] sm:$0xff]  ;;  %v41_v3 = vunpack.c.l.bf16 %v40_v1  ;;  %s175_s1 = smov [#allocation7]   ;;  %vm73_vm1 = vcmask 1041409   ;;  %vm76_vm2 = vcmask 25600  }
  0x28   :  { %v64_v15 = vand.u32 127, %v63_v14  ;;  %v66_v16 = vshrl.u32 %v63_v14, 7  ;;  %s84_s6 = sshll.u32 %s175_s1, 4  ;;  %s85_s6 = int_to_ptr.vmem [resolvable:$true] %s84_s6 }
  0x29   :  { %v42_v4 = vmul.f32 %v41_v3, %v38_v0  ;;  %v43_v5 = vmul.f32 %v41_v3, %v39_v2  ;;  %s143_s7 = scalar_lea.vmem %s85_s6, 32  ;;  %p148_p3 = scmp.lt.s32.totalorder %s85_s6, %s85_s6 }
  0x2a   :  { %v67_v18 = vsub.s32 %v64_v15, %v66_v16  ;;  %p144_p2 = scmp.ne.s32.totalorder %s85_s6, %s143_s7  ;;  %p149_p4 = scmp.lt.s32.totalorder %s143_s7, %s143_s7 }
  0x2b   :  { %v46_v6 = vcombine.high %v42_v4, %v42_v4  ;;  %v51_v7 = vsel %vm50_vm0, %v42_v4, 0.0  ;;  %v47_v8 = vcombine.high %v43_v5, %v43_v5  ;;  %v56_v10 = vsel %vm50_vm0, %v43_v5, 0.0 }
  0x2c   :  { %p150_p5 = por %p149_p4, %p148_p3 }
  0x2d   :  { %v52_v9 = vsel %vm50_vm0, %v46_v6, 0.0  ;;  %v57_v11 = vsel %vm50_vm0, %v47_v8, 0.0 }
  0x2e   :  { %v53_v12 = vadd.f32 %v52_v9, %v51_v7  ;;  %v58_v13 = vadd.f32 %v57_v11, %v56_v10  ;;  %p151_p6 = pnand %p150_p5, %p144_p2 }
  0x30   :  { %54 = vadd.xlane.f32.xlu0 %v53_v12 }
  0x34   :  { %59 = vadd.xlane.f32.xlu0 %v58_v13 }
  0xbd   :  { %v55_v17 = vpop.xlane.xlu0 %54 }
  0xbe   :  { %v68_v20 = vrot.slane %v55_v17, %v67_v18 }
  0xc1   :  { %v60_v19 = vpop.xlane.xlu0 %59 }
  0xc2   :  { %v72_v21 = vrot.slane %v60_v19, %v67_v18 }
  0xc4   :  { %v74_v22 = vsel %vm73_vm1, %v72_v21, %v68_v20 }
  0xc5   :  { %77 = vst.msk [vmem:[#allocation7] sm:$0x3] %vm76_vm2, %v74_v22 }
  0xc6   :  { %154 = shalt.err (!%p151_p6)
}
  0xc7   :  { %s155_s10 = scalar_lea.hbm %s229_s2, 32 }
  0xc8   :  { %p156_p7 = scmp.ne.s32.totalorder %s229_s2, %s155_s10  ;;  %p159_p8 = scmp.lt.u32.totalorder %s155_s10, %s229_s2 }
  0xca   :  { %p161_p9 = pnand %p159_p8, %p156_p7 }
  0xcc   :  { %164 = shalt.err (!%p161_p9)
}
  0xcd   :  { %87 = dma.vmem_to_hbm [thread:$0]  %s85_s6, 32, %s229_s2, [#allocation4]  }
  0xce   :  { %169 = dma.done.wait [#allocation4], 32  }
  0xcf   :  { %170 = vsyncadd [#allocation4], 4294967264 }
  0xd0   :  { %91 = vsyncpa [#allocation3], 1 }
  0xd1   :  { %92 = vsyncpa [#allocation6], 1 }
  0xd2   :  { %93 = vsyncpa [#allocation4], 1 }

</bundles_post_ra>
